<compile_context>
chip_gen: v5e
topology: v5e:2x2
jax: 0.10.0
libtpu: 0.0.40
codegen_flags: <defaults>
</compile_context>

<pallas_src>
import jax
import jax.numpy as jnp
from jax.experimental import pallas as pl
from jax.experimental.pallas import tpu as pltpu


# ----------------------------- Pallas kernel --------------------------------
def decoder_gru_seq_kernel(x_ref, h0_ref,
                           w_emb_ref, w_ih_ref, w_hh_ref, w_out_ref,
                           b_emb_ref, b_gi_ref, b_hn_ref, b_out_ref,
                           out_ref, h_ref):
    """One grid step == one decode step.  h_ref (final-hidden output block, constant
    block index) doubles as the VMEM-resident recurrent carry."""
    f32 = jnp.float32
    bf16 = jnp.bfloat16
    t = pl.program_id(0)
    H = h0_ref.shape[1]

    @pl.when(t == 0)
    def _():
        h_ref[...] = h0_ref[...]

    x = x_ref[...]                     # (B, O) f32, current-step input
    h = h_ref[...]                     # (B, H) f32 carry

    # embedded = relu(Linear(O->H)(x))
    emb = jnp.dot(x.astype(bf16), w_emb_ref[...],
                  preferred_element_type=f32) + b_emb_ref[...]
    emb = jnp.maximum(emb, 0.0)                                        # (B, H)

    # Single-step GRU cell, fused (B, 3H) gate slabs (gate order r, z, n).
    # b_gi already contains (b_ir+b_hr, b_iz+b_hz, b_in); gh carries no bias.
    gi = jnp.dot(emb.astype(bf16), w_ih_ref[...],
                 preferred_element_type=f32) + b_gi_ref[...]           # (B, 3H)
    gh = jnp.dot(h.astype(bf16), w_hh_ref[...],
                 preferred_element_type=f32)                           # (B, 3H)

    r = jax.nn.sigmoid(gi[:, 0:H] + gh[:, 0:H])
    z = jax.nn.sigmoid(gi[:, H:2 * H] + gh[:, H:2 * H])
    n = jnp.tanh(gi[:, 2 * H:3 * H] + r * (gh[:, 2 * H:3 * H] + b_hn_ref[...]))
    h_new = (1.0 - z) * n + z * h                                      # (B, H) f32

    # output = Linear(H->O)(gru_output)   (no activation / softmax in the module)
    out_ref[...] = jnp.dot(h_new.astype(bf16), w_out_ref[...],
                           preferred_element_type=f32) + b_out_ref[...]
    h_ref[...] = h_new                                                 # carry / final hidden


# ------------------------- one-time parameter packing ------------------------
def prepare_params(params, weight_dtype=jnp.bfloat16):
    """Transpose / pre-sum / cast once; the per-call forward passes these directly."""
    H = params["w_ih"].shape[1]
    b_ih, b_hh = params["b_ih"], params["b_hh"]
    b_gi = jnp.concatenate([b_ih[:2 * H] + b_hh[:2 * H], b_ih[2 * H:]])   # (3H,)
    return dict(
        w_emb=jnp.asarray(params["w_emb"].T, weight_dtype),   # (O, H)
        w_ih=jnp.asarray(params["w_ih"].T, weight_dtype),     # (H, 3H) gate order r,z,n
        w_hh=jnp.asarray(params["w_hh"].T, weight_dtype),     # (H, 3H)
        w_out=jnp.asarray(params["w_out"].T, weight_dtype),   # (H, O)
        b_emb=jnp.asarray(params["b_emb"], jnp.float32)[None, :],  # (1, H)
        b_gi=jnp.asarray(b_gi, jnp.float32)[None, :],               # (1, 3H)
        b_hn=jnp.asarray(b_hh[2 * H:], jnp.float32)[None, :],       # (1, H)
        b_out=jnp.asarray(params["b_out"], jnp.float32)[None, :],   # (1, O)
    )


# ------------------------------ JAX wrappers ----------------------------------
@jax.jit
def decoder_forward_seq(inputs, hidden, packed):
    """Fused T-step decode.
    inputs: (T, B, O) per-step inputs; hidden: (1, B, H) initial hidden.
    Returns (T, B, O) logits and (1, B, H) final hidden."""
    T, B, O = inputs.shape
    H = hidden.shape[-1]
    h0 = hidden[0]                                       # (B, H)

    def const_spec(arr):                                 # weight resident across all steps
        return pl.BlockSpec(arr.shape, lambda t: (0,) * arr.ndim)

    weights = (packed["w_emb"], packed["w_ih"], packed["w_hh"], packed["w_out"],
               packed["b_emb"], packed["b_gi"], packed["b_hn"], packed["b_out"])

    in_specs = [
        pl.BlockSpec((None, B, O), lambda t: (t, 0, 0)),   # x_t (per-step tile)
        pl.BlockSpec((B, H), lambda t: (0, 0)),            # h0 (fetched once)
    ] + [const_spec(w) for w in weights]

    out_specs = (
        pl.BlockSpec((None, B, O), lambda t: (t, 0, 0)),   # per-step logits
        pl.BlockSpec((B, H), lambda t: (0, 0)),            # resident hidden carry / final h
    )

    out, h_final = pl.pallas_call(
        decoder_gru_seq_kernel,
        grid=(T,),
        out_shape=(jax.ShapeDtypeStruct((T, B, O), jnp.float32),
                   jax.ShapeDtypeStruct((B, H), jnp.float32)),
        in_specs=in_specs,
        out_specs=out_specs,
        compiler_params=pltpu.CompilerParams(dimension_semantics=("arbitrary",)),
    )(inputs, h0, *weights)

    return out, h_final[None, :, :]                       # (T, B, O), (1, B, H)


def decoder_forward(inp, hidden, packed):
    """Single-step forward matching DecoderRNN.forward: inp (B, O), hidden (1, B, H)."""
    out, h_new = decoder_forward_seq(inp[None], hidden, packed)
    return out[0], h_new


# --------------------------- pure-JAX reference -------------------------------
def ref_step(inp, h, params):
    H = h.shape[-1]
    embedded = jax.nn.relu(inp @ params["w_emb"].T + params["b_emb"])
    gi = embedded @ params["w_ih"].T + params["b_ih"]
    gh = h @ params["w_hh"].T + params["b_hh"]
    r = jax.nn.sigmoid(gi[:, :H] + gh[:, :H])
    z = jax.nn.sigmoid(gi[:, H:2 * H] + gh[:, H:2 * H])
    n = jnp.tanh(gi[:, 2 * H:] + r * gh[:, 2 * H:])
    h_new = (1.0 - z) * n + z * h
    out = h_new @ params["w_out"].T + params["b_out"]
    return out, h_new


def ref_forward_seq(inputs, hidden, params):
    h = hidden[0]
    outs = []
    for t in range(inputs.shape[0]):
        o, h = ref_step(inputs[t], h, params)
        outs.append(o)
    return jnp.stack(outs), h[None, :, :]


# --------------------------------- init ---------------------------------------
def make_params(key, hidden_size, output_size):
    H, O = hidden_size, output_size
    keys = jax.random.split(key, 4)

    def lin(k, out_f, in_f):
        bound = 1.0 / jnp.sqrt(in_f)
        kw, kb = jax.random.split(k)
        return (jax.random.uniform(kw, (out_f, in_f), jnp.float32, -bound, bound),
                jax.random.uniform(kb, (out_f,), jnp.float32, -bound, bound))

    w_emb, b_emb = lin(keys[0], H, O)          # nn.Linear(output_size, hidden_size)
    w_out, b_out = lin(keys[1], O, H)          # nn.Linear(hidden_size, output_size)
    w_ih, b_ih = lin(keys[2], 3 * H, H)        # GRU weight_ih_l0 / bias_ih_l0
    w_hh, b_hh = lin(keys[3], 3 * H, H)        # GRU weight_hh_l0 / bias_hh_l0
    return dict(w_emb=w_emb, b_emb=b_emb, w_out=w_out, b_out=b_out,
                w_ih=w_ih, b_ih=b_ih, w_hh=w_hh, b_hh=b_hh)


# --------------------------------- main ---------------------------------------
if __name__ == "__main__":
    # B = full sublane; H, O multiples of 128 so all slices / stores are lane-dense.
    B, H, O, T = 8, 128, 128, 4

    key = jax.random.PRNGKey(0)
    k_in, k_h, k_p = jax.random.split(key, 3)
    inputs = jax.random.normal(k_in, (T, B, O), jnp.float32)     # teacher-forced inputs
    hidden = jax.random.normal(k_h, (1, B, H), jnp.float32)

    raw_params = make_params(k_p, H, O)
    packed_params = prepare_params(raw_params)   # one-time pack, reused every call

    # Fused T-step decode (weights VMEM-resident, hidden carried in VMEM).
    outs, h_final = decoder_forward_seq(inputs, hidden, packed_params)
    jax.block_until_ready((outs, h_final))

    outs_ref, h_final_ref = ref_forward_seq(inputs, hidden, raw_params)
    assert outs.shape == (T, B, O) and h_final.shape == (1, B, H)
    # tolerance covers bf16 weight/activation rounding vs the f32 reference
    assert jnp.allclose(outs, outs_ref, atol=2e-2, rtol=2e-2)
    assert jnp.allclose(h_final, h_final_ref, atol=2e-2, rtol=2e-2)

    # Single-step path (exact DecoderRNN.forward signature).
    out1, h1 = decoder_forward(inputs[0], hidden, packed_params)
    jax.block_until_ready((out1, h1))
    out1_ref, h1_sq_ref = ref_step(inputs[0], hidden[0], raw_params)
    assert out1.shape == (B, O) and h1.shape == (1, B, H)
    assert jnp.allclose(out1, out1_ref, atol=2e-2, rtol=2e-2)
    assert jnp.allclose(h1[0], h1_sq_ref, atol=2e-2, rtol=2e-2)

    print("KERNEL_OK")
</pallas_src>

<mosaic_0001>
module attributes {stable_mosaic.version = 11 : i64} {
  func.func @decoder_gru_seq_kernel(%arg0: i32, %arg1: memref<1x8x128xf32, #tpu.memory_space<vmem>>, %arg2: memref<8x128xf32, #tpu.memory_space<vmem>>, %arg3: memref<128x128xbf16, #tpu.memory_space<vmem>>, %arg4: memref<128x384xbf16, #tpu.memory_space<vmem>>, %arg5: memref<128x384xbf16, #tpu.memory_space<vmem>>, %arg6: memref<128x128xbf16, #tpu.memory_space<vmem>>, %arg7: memref<1x128xf32, #tpu.memory_space<vmem>>, %arg8: memref<1x384xf32, #tpu.memory_space<vmem>>, %arg9: memref<1x128xf32, #tpu.memory_space<vmem>>, %arg10: memref<1x128xf32, #tpu.memory_space<vmem>>, %arg11: memref<1x8x128xf32, #tpu.memory_space<vmem>>, %arg12: memref<8x128xf32, #tpu.memory_space<vmem>>) attributes {dimension_semantics = [#tpu.dimension_semantics<arbitrary>], iteration_bounds = array<i64: 4>, scalar_prefetch = 0 : i64, scratch_operands = 0 : i64, tpu.core_type = #tpu.core_type<tc>, window_params = [{transform_indices = @transform_0, window_bounds = array<i64: 1, 8, 128>}, {pipeline_mode = #tpu.pipeline_mode<synchronous>, transform_indices = @transform_1, window_bounds = array<i64: 8, 128>}, {pipeline_mode = #tpu.pipeline_mode<synchronous>, transform_indices = @transform_2, window_bounds = array<i64: 128, 128>}, {pipeline_mode = #tpu.pipeline_mode<synchronous>, transform_indices = @transform_3, window_bounds = array<i64: 128, 384>}, {pipeline_mode = #tpu.pipeline_mode<synchronous>, transform_indices = @transform_4, window_bounds = array<i64: 128, 384>}, {pipeline_mode = #tpu.pipeline_mode<synchronous>, transform_indices = @transform_5, window_bounds = array<i64: 128, 128>}, {pipeline_mode = #tpu.pipeline_mode<synchronous>, transform_indices = @transform_6, window_bounds = array<i64: 1, 128>}, {pipeline_mode = #tpu.pipeline_mode<synchronous>, transform_indices = @transform_7, window_bounds = array<i64: 1, 384>}, {pipeline_mode = #tpu.pipeline_mode<synchronous>, transform_indices = @transform_8, window_bounds = array<i64: 1, 128>}, {pipeline_mode = #tpu.pipeline_mode<synchronous>, transform_indices = @transform_9, window_bounds = array<i64: 1, 128>}, {transform_indices = @transform_10, window_bounds = array<i64: 1, 8, 128>}, {pipeline_mode = #tpu.pipeline_mode<synchronous>, transform_indices = @transform_11, window_bounds = array<i64: 8, 128>}]} {
    %c0_i32 = arith.constant 0 : i32
    %0 = arith.cmpi eq, %arg0, %c0_i32 : i32
    %1 = arith.extui %0 : i1 to i32
    %c0_i32_0 = arith.constant 0 : i32
    %2 = arith.cmpi ne, %1, %c0_i32_0 : i32
    scf.if %2 {
      %c0_33 = arith.constant 0 : index
      %c0_34 = arith.constant 0 : index
      %62 = vector.load %arg2[%c0_33, %c0_34] : memref<8x128xf32, #tpu.memory_space<vmem>>, vector<8x128xf32>
      %c0_35 = arith.constant 0 : index
      %c0_36 = arith.constant 0 : index
      %63 = vector.load %arg12[%c0_35, %c0_36] : memref<8x128xf32, #tpu.memory_space<vmem>>, vector<8x128xf32>
      tpu.vector_store %arg12[%c0_35, %c0_36], %62 {strides = array<i32>} : memref<8x128xf32, #tpu.memory_space<vmem>>, vector<8x128xf32>,
    } else {
    }
    %c0 = arith.constant 0 : index
    %c0_1 = arith.constant 0 : index
    %c0_2 = arith.constant 0 : index
    %3 = vector.load %arg1[%c0, %c0_1, %c0_2] : memref<1x8x128xf32, #tpu.memory_space<vmem>>, vector<1x8x128xf32>
    %4 = vector.shape_cast %3 : vector<1x8x128xf32> to vector<8x128xf32>
    %c0_3 = arith.constant 0 : index
    %c0_4 = arith.constant 0 : index
    %5 = vector.load %arg12[%c0_3, %c0_4] : memref<8x128xf32, #tpu.memory_space<vmem>>, vector<8x128xf32>
    %6 = arith.truncf %4 : vector<8x128xf32> to vector<8x128xbf16>
    %c0_5 = arith.constant 0 : index
    %c0_6 = arith.constant 0 : index
    %7 = vector.load %arg3[%c0_5, %c0_6] : memref<128x128xbf16, #tpu.memory_space<vmem>>, vector<128x128xbf16>
    %cst = arith.constant dense<0.000000e+00> : vector<8x128xf32>
    %8 = tpu.matmul %6, %7, %cst {dimension_numbers = #tpu.dot_dimension_numbers<[1], [0], [0], [1], [0, 0, 1, 1], [], []>} : vector<8x128xbf16>, vector<128x128xbf16>, vector<8x128xf32> -> vector<8x128xf32>
    %c0_7 = arith.constant 0 : index
    %c0_8 = arith.constant 0 : index
    %9 = vector.load %arg7[%c0_7, %c0_8] : memref<1x128xf32, #tpu.memory_space<vmem>>, vector<1x128xf32>
    %10 = vector.broadcast %9 : vector<1x128xf32> to vector<8x128xf32>
    %11 = arith.addf %8, %10 : vector<8x128xf32>
    %cst_9 = arith.constant 0.000000e+00 : f32
    %12 = vector.broadcast %cst_9 : f32 to vector<8x128xf32>
    %13 = arith.maximumf %11, %12 : vector<8x128xf32>
    %14 = arith.truncf %13 : vector<8x128xf32> to vector<8x128xbf16>
    %c0_10 = arith.constant 0 : index
    %c0_11 = arith.constant 0 : index
    %15 = vector.load %arg4[%c0_10, %c0_11] : memref<128x384xbf16, #tpu.memory_space<vmem>>, vector<128x384xbf16>
    %cst_12 = arith.constant dense<0.000000e+00> : vector<8x384xf32>
    %16 = tpu.matmul %14, %15, %cst_12 {dimension_numbers = #tpu.dot_dimension_numbers<[1], [0], [0], [1], [0, 0, 1, 1], [], []>} : vector<8x128xbf16>, vector<128x384xbf16>, vector<8x384xf32> -> vector<8x384xf32>
    %c0_13 = arith.constant 0 : index
    %c0_14 = arith.constant 0 : index
    %17 = vector.load %arg8[%c0_13, %c0_14] : memref<1x384xf32, #tpu.memory_space<vmem>>, vector<1x384xf32>
    %18 = vector.broadcast %17 : vector<1x384xf32> to vector<8x384xf32>
    %19 = arith.addf %16, %18 : vector<8x384xf32>
    %20 = arith.truncf %5 : vector<8x128xf32> to vector<8x128xbf16>
    %c0_15 = arith.constant 0 : index
    %c0_16 = arith.constant 0 : index
    %21 = vector.load %arg5[%c0_15, %c0_16] : memref<128x384xbf16, #tpu.memory_space<vmem>>, vector<128x384xbf16>
    %cst_17 = arith.constant dense<0.000000e+00> : vector<8x384xf32>
    %22 = tpu.matmul %20, %21, %cst_17 {dimension_numbers = #tpu.dot_dimension_numbers<[1], [0], [0], [1], [0, 0, 1, 1], [], []>} : vector<8x128xbf16>, vector<128x384xbf16>, vector<8x384xf32> -> vector<8x384xf32>
    %23 = vector.extract_strided_slice %19 {offsets = [0, 0], sizes = [8, 128], strides = [1, 1]} : vector<8x384xf32> to vector<8x128xf32>
    %24 = vector.extract_strided_slice %22 {offsets = [0, 0], sizes = [8, 128], strides = [1, 1]} : vector<8x384xf32> to vector<8x128xf32>
    %25 = arith.addf %23, %24 : vector<8x128xf32>
    %26 = arith.negf %25 : vector<8x128xf32>
    %27 = math.exp %26 : vector<8x128xf32>
    %cst_18 = arith.constant 1.000000e+00 : f32
    %28 = vector.broadcast %cst_18 : f32 to vector<8x128xf32>
    %29 = arith.addf %28, %27 : vector<8x128xf32>
    %30 = arith.divf %28, %29 : vector<8x128xf32>
    %31 = vector.extract_strided_slice %19 {offsets = [0, 128], sizes = [8, 128], strides = [1, 1]} : vector<8x384xf32> to vector<8x128xf32>
    %32 = vector.extract_strided_slice %22 {offsets = [0, 128], sizes = [8, 128], strides = [1, 1]} : vector<8x384xf32> to vector<8x128xf32>
    %33 = arith.addf %31, %32 : vector<8x128xf32>
    %34 = arith.negf %33 : vector<8x128xf32>
    %35 = math.exp %34 : vector<8x128xf32>
    %cst_19 = arith.constant 1.000000e+00 : f32
    %36 = vector.broadcast %cst_19 : f32 to vector<8x128xf32>
    %37 = arith.addf %36, %35 : vector<8x128xf32>
    %38 = arith.divf %36, %37 : vector<8x128xf32>
    %39 = vector.extract_strided_slice %19 {offsets = [0, 256], sizes = [8, 128], strides = [1, 1]} : vector<8x384xf32> to vector<8x128xf32>
    %40 = vector.extract_strided_slice %22 {offsets = [0, 256], sizes = [8, 128], strides = [1, 1]} : vector<8x384xf32> to vector<8x128xf32>
    %c0_20 = arith.constant 0 : index
    %c0_21 = arith.constant 0 : index
    %41 = vector.load %arg9[%c0_20, %c0_21] : memref<1x128xf32, #tpu.memory_space<vmem>>, vector<1x128xf32>
    %42 = vector.broadcast %41 : vector<1x128xf32> to vector<8x128xf32>
    %43 = arith.addf %40, %42 : vector<8x128xf32>
    %44 = arith.mulf %30, %43 : vector<8x128xf32>
    %45 = arith.addf %39, %44 : vector<8x128xf32>
    %46 = math.tanh %45 : vector<8x128xf32>
    %cst_22 = arith.constant 1.000000e+00 : f32
    %47 = vector.broadcast %cst_22 : f32 to vector<8x128xf32>
    %48 = arith.subf %47, %38 : vector<8x128xf32>
    %49 = arith.mulf %48, %46 : vector<8x128xf32>
    %50 = arith.mulf %38, %5 : vector<8x128xf32>
    %51 = arith.addf %49, %50 : vector<8x128xf32>
    %52 = arith.truncf %51 : vector<8x128xf32> to vector<8x128xbf16>
    %c0_23 = arith.constant 0 : index
    %c0_24 = arith.constant 0 : index
    %53 = vector.load %arg6[%c0_23, %c0_24] : memref<128x128xbf16, #tpu.memory_space<vmem>>, vector<128x128xbf16>
    %cst_25 = arith.constant dense<0.000000e+00> : vector<8x128xf32>
    %54 = tpu.matmul %52, %53, %cst_25 {dimension_numbers = #tpu.dot_dimension_numbers<[1], [0], [0], [1], [0, 0, 1, 1], [], []>} : vector<8x128xbf16>, vector<128x128xbf16>, vector<8x128xf32> -> vector<8x128xf32>
    %c0_26 = arith.constant 0 : index
    %c0_27 = arith.constant 0 : index
    %55 = vector.load %arg10[%c0_26, %c0_27] : memref<1x128xf32, #tpu.memory_space<vmem>>, vector<1x128xf32>
    %56 = vector.broadcast %55 : vector<1x128xf32> to vector<8x128xf32>
    %57 = arith.addf %54, %56 : vector<8x128xf32>
    %c0_28 = arith.constant 0 : index
    %c0_29 = arith.constant 0 : index
    %c0_30 = arith.constant 0 : index
    %58 = vector.load %arg11[%c0_28, %c0_29, %c0_30] : memref<1x8x128xf32, #tpu.memory_space<vmem>>, vector<1x8x128xf32>
    %59 = vector.shape_cast %58 : vector<1x8x128xf32> to vector<8x128xf32>
    %60 = vector.shape_cast %57 : vector<8x128xf32> to vector<1x8x128xf32>
    tpu.vector_store %arg11[%c0_28, %c0_29, %c0_30], %60 {strides = array<i32>} : memref<1x8x128xf32, #tpu.memory_space<vmem>>, vector<1x8x128xf32>,
    %c0_31 = arith.constant 0 : index
    %c0_32 = arith.constant 0 : index
    %61 = vector.load %arg12[%c0_31, %c0_32] : memref<8x128xf32, #tpu.memory_space<vmem>>, vector<8x128xf32>
    tpu.vector_store %arg12[%c0_31, %c0_32], %51 {strides = array<i32>} : memref<8x128xf32, #tpu.memory_space<vmem>>, vector<8x128xf32>,
    return
  }
  func.func @transform_0(%arg0: i32) -> (i32, i32, i32) {
    %c0_i32 = arith.constant 0 : i32
    %c0_i32_0 = arith.constant 0 : i32
    %c0_i32_1 = arith.constant 0 : i32
    return %arg0, %c0_i32, %c0_i32_0 : i32, i32, i32
  }
  func.func @transform_1(%arg0: i32) -> (i32, i32) {
    %c0_i32 = arith.constant 0 : i32
    %c0_i32_0 = arith.constant 0 : i32
    %c0_i32_1 = arith.constant 0 : i32
    return %c0_i32, %c0_i32_0 : i32, i32
  }
  func.func @transform_2(%arg0: i32) -> (i32, i32) {
    %c0_i32 = arith.constant 0 : i32
    %c0_i32_0 = arith.constant 0 : i32
    %c0_i32_1 = arith.constant 0 : i32
    return %c0_i32, %c0_i32_0 : i32, i32
  }
  func.func @transform_3(%arg0: i32) -> (i32, i32) {
    %c0_i32 = arith.constant 0 : i32
    %c0_i32_0 = arith.constant 0 : i32
    %c0_i32_1 = arith.constant 0 : i32
    return %c0_i32, %c0_i32_0 : i32, i32
  }
  func.func @transform_4(%arg0: i32) -> (i32, i32) {
    %c0_i32 = arith.constant 0 : i32
    %c0_i32_0 = arith.constant 0 : i32
    %c0_i32_1 = arith.constant 0 : i32
    return %c0_i32, %c0_i32_0 : i32, i32
  }
  func.func @transform_5(%arg0: i32) -> (i32, i32) {
    %c0_i32 = arith.constant 0 : i32
    %c0_i32_0 = arith.constant 0 : i32
    %c0_i32_1 = arith.constant 0 : i32
    return %c0_i32, %c0_i32_0 : i32, i32
  }
  func.func @transform_6(%arg0: i32) -> (i32, i32) {
    %c0_i32 = arith.constant 0 : i32
    %c0_i32_0 = arith.constant 0 : i32
    %c0_i32_1 = arith.constant 0 : i32
    return %c0_i32, %c0_i32_0 : i32, i32
  }
  func.func @transform_7(%arg0: i32) -> (i32, i32) {
    %c0_i32 = arith.constant 0 : i32
    %c0_i32_0 = arith.constant 0 : i32
    %c0_i32_1 = arith.constant 0 : i32
    return %c0_i32, %c0_i32_0 : i32, i32
  }
  func.func @transform_8(%arg0: i32) -> (i32, i32) {
    %c0_i32 = arith.constant 0 : i32
    %c0_i32_0 = arith.constant 0 : i32
    %c0_i32_1 = arith.constant 0 : i32
    return %c0_i32, %c0_i32_0 : i32, i32
  }
  func.func @transform_9(%arg0: i32) -> (i32, i32) {
    %c0_i32 = arith.constant 0 : i32
    %c0_i32_0 = arith.constant 0 : i32
    %c0_i32_1 = arith.constant 0 : i32
    return %c0_i32, %c0_i32_0 : i32, i32
  }
  func.func @transform_10(%arg0: i32) -> (i32, i32, i32) {
    %c0_i32 = arith.constant 0 : i32
    %c0_i32_0 = arith.constant 0 : i32
    %c0_i32_1 = arith.constant 0 : i32
    return %arg0, %c0_i32, %c0_i32_0 : i32, i32, i32
  }
  func.func @transform_11(%arg0: i32) -> (i32, i32) {
    %c0_i32 = arith.constant 0 : i32
    %c0_i32_0 = arith.constant 0 : i32
    %c0_i32_1 = arith.constant 0 : i32
    return %c0_i32, %c0_i32_0 : i32, i32
  }
}

</mosaic_0001>

<bundles_post_ra>
// kernel: decoder_forward_seq.1
= control target key start
LH: loop header
LB: loop body
LE: loop exit
PB: predicated region body
PF: predicated region fallthrough
CT: control target
= control target key end

     0   :  { %s2387_s0 = inlined_call_operand.hbm [shape: f32[4,8,128], index: 0, kind: input, shape index: {}]   ;;  %s2388_s1 = inlined_call_operand.hbm [shape: f32[8,128], index: 1, kind: input, shape index: {}]   ;;  %s2389_s2 = inlined_call_operand.hbm [shape: bf16[128,128], index: 2, kind: input, shape index: {}]   ;;  %s2390_s3 = inlined_call_operand.hbm [shape: bf16[128,384], index: 3, kind: input, shape index: {}]   ;;  %s2391_s4 = inlined_call_operand.hbm [shape: bf16[128,384], index: 4, kind: input, shape index: {}]   ;;  %s2392_s5 = inlined_call_operand.hbm [shape: bf16[128,128], index: 5, kind: input, shape index: {}]   ;;  %s2393_s6 = inlined_call_operand.hbm [shape: f32[1,128], index: 6, kind: input, shape index: {}]   ;;  %s2394_s7 = inlined_call_operand.vmem [shape: f32[1,384], index: 7, kind: input, shape index: {}]   ;;  %s2395_s8 = inlined_call_operand.vmem [shape: f32[1,128], index: 8, kind: input, shape index: {}]   ;;  %s2396_s9 = inlined_call_operand.vmem [shape: f32[1,128], index: 9, kind: input, shape index: {}]   ;;  %s2397_s10 = inlined_call_operand.hbm [shape: f32[4,8,128], index: 10, kind: output, shape index: {0}]   ;;  %s2398_s11 = inlined_call_operand.hbm [shape: f32[8,128], index: 11, kind: output, shape index: {1}]  }
   0x1   :  { %2400 = sst [smem:[#allocation23_spill]] %s2388_s1 }
   0x2   :  { %2401 = sst [smem:[#allocation24_spill]] %s2389_s2 }
   0x3   :  { %2402 = sst [smem:[#allocation25_spill]] %s2390_s3 }
   0x4   :  { %2403 = sst [smem:[#allocation26_spill]] %s2391_s4 }
   0x5   :  { %2404 = sst [smem:[#allocation27_spill]] %s2392_s5 }
   0x6   :  { %2405 = sst [smem:[#allocation28_spill]] %s2396_s9 }
   0x7   :  { %17 = vsyncpa [#allocation3], 0 }
   0x8   :  { %19 = vsyncpa [#allocation3 + $0x1], 0 }
   0x9   :  { %20 = vsyncpa [#allocation6], 0 }
   0xa   :  { %21 = vsyncpa [#allocation9], 0 }
   0xb   :  { %22 = vsyncpa [#allocation12], 0 }
   0xc   :  { %23 = vsyncpa [#allocation4], 0 }
   0xd   :  { %25 = vsyncpa [#allocation4 + $0x1], 0 }
   0xe   :  { %26 = vsyncpa [#allocation16], 0  ;;  %s2173_s17 = smov 0   ;;  %s2175_s18 = smov 0  }
   0xf   :  { %s2177_s19 = smov 0   ;;  %s2179_s20 = smov 0  }
  0x10 LB: > { %s2406_s1 = sld [smem:[#allocation23_spill]]  ;;  %s2197_s24 = sadd.s32 4294967295, %s2100_s20   ;;  %s2100_s20 = sphi %s2179_s20, %s2426_s20   ;;  %s2096_s19 = sphi %s2177_s19, %s2425_s19   ;;  %s2092_s18 = sphi %s2175_s18, %s2424_s18   ;;  %s2088_s17 = sphi %s2173_s17, %s2423_s17  }
  0x11   : > { %p1301_p0 = scmp.ge.s32.totalorder %s2100_s20, 1  ;;  %p53_p1 = scmp.eq.s32.totalorder %s2197_s24, 0 }
  0x12   : > { %p299_p2 = scmp.lt.s32.totalorder %s2100_s20, 5  ;;  %s2102_s26 = smov [#allocation5]  }
  0x13   : > { %s313_s27 = sshll.u32 %s2102_s26, 4  ;;  %s2408_s3 = sld [smem:[#allocation25_spill]]  ;;  %s314_s27 = int_to_ptr.vmem [resolvable:$true] %s313_s27 }
  0x14   : > { %p2203_p4 = pnand %p1301_p0, %p299_p2  ;;  %s2103_s13 = smov [#allocation8]  }
  0x15   : > { %s338_s14 = sshll.u32 %s2103_s13, 4  ;;  %s2104_s15 = smov 192   ;;  %s339_s14 = int_to_ptr.vmem [resolvable:$true] %s338_s14 }
  0x16   : > { %s311_s23 = sshll.u32 %s2406_s1, 4  ;;  %p1681_p5 = pneg %p2203_p4  ;;  %s312_s23 = int_to_ptr.hbm [resolvable:$true] %s311_s23 }
  0x17   : > { %s2105_s16 = smov 12   ;;  %s2410_s5 = sld [smem:[#allocation27_spill]] }
  0x18   : > { %p2214_p6 = pnand %p1681_p5, %p53_p1  ;;  %s2106_s28 = smov [#allocation11]  }
  0x19   : > { %s336_s30 = sshll.u32 %s2408_s3, 4  ;;  %s366_s29 = sshll.u32 %s2106_s28, 4  ;;  %s337_s30 = int_to_ptr.hbm [resolvable:$true] %s336_s30  ;;  %s367_s29 = int_to_ptr.vmem [resolvable:$true] %s366_s29 }
  0x1a   : > { %1684 = dma.hbm_to_vmem [thread:$0]  (!%p2214_p6), %s312_s23, 128, %s314_s27, [#allocation6]  }
  0x1b   : > { %1690 = dma.hbm_to_vmem [thread:$0]  (!%p2214_p6), %s337_s30, 3072, %s339_s14, [#allocation9], %s2104_s15, %s2104_s15, %s2105_s16  }
  0x1c   : > { %s2411_s2 = sld [smem:[#allocation24_spill]]  ;;  %s2107_s9 = smov 64  }
  0x1d   : > { %s364_s26 = sshll.u32 %s2410_s5, 4  ;;  %s2108_s23 = smov 4   ;;  %s365_s26 = int_to_ptr.hbm [resolvable:$true] %s364_s26 }
  0x1e   : > { %1696 = dma.hbm_to_vmem [thread:$0]  (!%p2214_p6), %s365_s26, 1024, %s367_s29, [#allocation12], %s2107_s9, %s2107_s9, %s2108_s23  }
  0x1f   : > { %s2109_s27 = smov [#allocation7]   ;;  %s2412_s4 = sld [smem:[#allocation26_spill]] }
  0x20   : > { %s324_s30 = sshll.u32 %s2109_s27, 4  ;;  %s379_s26 = sshll.u32 %s2393_s6, 4  ;;  %s325_s30 = int_to_ptr.vmem [resolvable:$true] %s324_s30  ;;  %s380_s26 = int_to_ptr.hbm [resolvable:$true] %s379_s26 }
  0x21   : > { %s2110_s28 = smov [#allocation10]   ;;  %s2111_s27 = smov [#allocation13]  }
  0x22   : > { %s322_s13 = sshll.u32 %s2411_s2, 4  ;;  %s352_s29 = sshll.u32 %s2110_s28, 4  ;;  %s323_s13 = int_to_ptr.hbm [resolvable:$true] %s322_s13  ;;  %s353_s29 = int_to_ptr.vmem [resolvable:$true] %s352_s29 }
  0x23   : > { %1687 = dma.hbm_to_vmem [thread:$0]  (!%p2214_p6), %s323_s13, 1024, %s325_s30, [#allocation6], %s2107_s9, %s2107_s9, %s2108_s23  }
  0x24   : > { %s381_s9 = sshll.u32 %s2111_s27, 4  ;;  %s1300_s13 = sadd.s32 4294967294, %s2100_s20   ;;  %s382_s9 = int_to_ptr.vmem [resolvable:$true] %s381_s9 }
  0x25   : > { %s350_s22 = sshll.u32 %s2412_s4, 4  ;;  %s2244_s23 = sadd.s32 1, %s2100_s20   ;;  %s351_s22 = int_to_ptr.hbm [resolvable:$true] %s350_s22 }
  0x26   : > { %1693 = dma.hbm_to_vmem [thread:$0]  (!%p2214_p6), %s351_s22, 3072, %s353_s29, [#allocation9], %s2104_s15, %s2104_s15, %s2105_s16  }
  0x27   : > { %1699 = dma.hbm_to_vmem [thread:$0]  (!%p2214_p6), %s380_s26, 16, %s382_s9, [#allocation12]  }
  0x28   : > { %s36_s30 = ssub.s32 %s2100_s20, %s2244_s23  ;;  %s39_s14 = sadd.s32 1, %s2096_s19 }
  0x29   : > { %p37_p7 = scmp.eq.s32.totalorder %s36_s30, 0  ;;  %p46_p8 = scmp.ne.s32.totalorder %s2096_s19, %s2092_s18 }
  0x2a   : > { %p47_p9 = scmp.eq.s32.totalorder %s2100_s20, 0  ;;  %p52_p10 = scmp.ne.s32.totalorder %s2092_s18, %s2088_s17 }
  0x2b   : > { %s2255_s15 = scalar_select %p37_p7, %s2096_s19, %s39_s14  }
  0x2c   : > { %p2257_p11 = por %p47_p9, %p46_p8  ;;  %p2263_p12 = por %p53_p1, %p52_p10 }
  0x2d   : > { %p2399_p13 = scmp.eq.s32.totalorder %s2197_s24, 3  ;;  %p271_p0 = scmp.eq.s32.totalorder %s1300_s13, 3 }
  0x2e   : > { %p1714_p2 = scmp.lt.s32.totalorder %s2100_s20, 4  ;;  %s401_s21 = sand.u32 1, %s2096_s19  }
  0x2f   : > { %p2272_p5 = por %p2399_p13, %p46_p8  ;;  %p2276_p6 = por %p271_p0, %p52_p10 }
  0x30   : > { %s1309_s3 = sshll.u32 %s401_s21, 3  ;;  %s1310_s26 = sshll.u32 %s2100_s20, 3 }
  0x31   : > { %s409_s27 = scalar_lea.hbm %s2387_s0, %s1310_s26  ;;  %s405_s9 = scalar_lea.vmem [#allocation2], %s1309_s3 }
  0x32   : > { %s413_s30 = sshll.u32 %s405_s9, 4  ;;  %s411_s13 = sshll.u32 %s409_s27, 4  ;;  %s414_s30 = int_to_ptr.vmem [resolvable:$true] %s413_s30  ;;  %s412_s13 = int_to_ptr.hbm [resolvable:$true] %s411_s13 }
  0x33   : > { %p2286_p7 = pnand %p1714_p2, %p2257_p11  ;;  %s402_s2 = scalar_lea.sflag [#allocation3], %s401_s21 }
  0x34   : > { %s1960_s4 = sshra.s32 %s412_s13, 4  ;;  %s1967_s28 = scalar_lea.hbm %s2387_s0, 32  ;;  %s1961_s4 = int_to_ptr.hbm [resolvable:$true] %s1960_s4 }
  0x35   : > { %s1962_s5 = scalar_lea.hbm %s1961_s4, 8  ;;  %p1964_p9 = pneg %p2286_p7 }
  0x36   : > { %p1963_p8 = scmp.ne.s32.totalorder %s1961_s4, %s1962_s5  ;;  %p1968_p11 = scmp.lt.s32.totalorder %s1961_s4, %s2387_s0 }
  0x37   : > { %p1969_p2 = scmp.lt.s32.totalorder %s1967_s28, %s1962_s5 }
  0x38   : > { %p1965_p10 = pnand %p1964_p9, %p1963_p8 }
  0x39   : > { %p1970_p13 = por %p1969_p2, %p1968_p11 }
  0x3a   : > { %p1966_p0 = pneg %p1965_p10 }
  0x3c   : > { %p1971_p3 = pnand %p1970_p13, %p1966_p0 }
  0x3e   : > { %1974 = shalt.err (!%p1971_p3)
}
  0x3f   : > { %1703 = dma.hbm_to_vmem [thread:$0]  (!%p2286_p7), %s412_s13, 128, %s414_s30, %s402_s2  }
  0x40   : > { %422 = sbr.rel (%p2203_p4) target bundleno = 572 (0x23c), region = 60  ;;  %s2303_s21 = sand.u32 (!%p2203_p4), 1, %s2092_s18  }
  0x41   : > { %s1312_s27 = sshll.u32 (!%p2203_p4), %s2303_s21, 3  ;;  %s425_s9 = scalar_lea.sflag (!%p2203_p4), [#allocation3], %s2303_s21 }
  0x42   : > { %s2307_s3 = scalar_lea.vmem (!%p2203_p4), [#allocation2], %s1312_s27 }
  0x45   : > { %2063 = dma.done.wait (%p2263_p12), %s425_s9, 128  }
  0x46   : > { %2065 = vsyncadd (%p2263_p12), %s425_s9, 4294967168 }
  0x47   : > { %2067 = dma.done.wait (%p53_p1), [#allocation6], 1152  }
  0x48   : > { %2069 = vsyncadd (%p53_p1), [#allocation6], 4294966144 }
  0x49   : > { %2071 = dma.done.wait (%p53_p1), [#allocation9], 6144  }
  0x4a   : > { %2073 = vsyncadd (%p53_p1), [#allocation9], 4294961152 }
  0x4b   : > { %2075 = dma.done.wait (%p53_p1), [#allocation12], 1040  }
  0x4c   : > { %2077 = vsyncadd (%p53_p1), [#allocation12], 4294966256  ;;  %s2325_s2 = scalar_lea.vmem [#allocation14], %s1312_s27  ;;  %p2418_p3 = scmp.ne.s32.totalorder %s2197_s24, 0 }
  0x4e   : > { %501 = sbr.rel (%p2418_p3) target bundleno = 85 (0x55), region = 92 }
  0x53   : > { %v502_v0 = vld [vmem:[#allocation5] sm:$0xff] }
  0x54   : > { %503 = vst [vmem:[#allocation15] sm:$0xff] %v502_v0 }
  0x55 PF: > { %v1592_v1 = vld [vmem:[#allocation7 + $0x38] sm:$0xff]  ;;  %v1591_v2 = vld [vmem:[#allocation7 + $0x30] sm:$0xff]  ;;  %v1439_v3 = vld [vmem:[#allocation8 + $0xa8] sm:$0xf]  ;;  %s2112_s30 = smov [#allocation15]   ;;  %s1160_s28 = sshll.u32 %s2398_s11, 4  ;;  %s1161_s28 = int_to_ptr.hbm [resolvable:$true] %s1160_s28 }
  0x56   : > { %575 = vmatpush.bf16.msra.mxu0 %v1592_v1  ;;  %v1615_v4 = vld [vmem:[#allocation8 + $0xb0] sm:$0xf0]  ;;  %v1427_v5 = vld [vmem:[#allocation8 + $0x90] sm:$0xf]  ;;  %v1612_v7 = vld [vmem:[#allocation8 + $0x98] sm:$0xf0] }
  0x57   : > { %v1440_v6 = vor.u32 %v1615_v4, %v1439_v3  ;;  %v1614_v8 = vld [vmem:[#allocation8 + $0xac] sm:$0xf]  ;;  %v1441_v9 = vld [vmem:[#allocation8 + $0xb4] sm:$0xf0]  ;;  %v1611_v11 = vld [vmem:[#allocation8 + $0x94] sm:$0xf]  ;;  %v1428_v13 = vor.u32 %v1612_v7, %v1427_v5 }
  0x58   : > { %v1444_v10 = vor.u32 %v1614_v8, %v1441_v9  ;;  %v1590_v12 = vld [vmem:[#allocation7 + $0x28] sm:$0xff]  ;;  %v1429_v14 = vld [vmem:[#allocation8 + $0x9c] sm:$0xf0]  ;;  %v1415_v15 = vld [vmem:[#allocation8 + $0x78] sm:$0xf]  ;;  %s1158_s13 = sshll.u32 %s2112_s30, 4  ;;  %s1159_s13 = int_to_ptr.vmem [resolvable:$true] %s1158_s13 }
  0x59   : > { %758 = vmatpush.bf16.msra.mxu1 %v1440_v6  ;;  %v1609_v16 = vld [vmem:[#allocation8 + $0x80] sm:$0xf0]  ;;  %v1432_v17 = vor.u32 %v1611_v11, %v1429_v14  ;;  %v1608_v18 = vld [vmem:[#allocation8 + $0x7c] sm:$0xf]  ;;  %v1417_v19 = vld [vmem:[#allocation8 + $0x84] sm:$0xf0] }
  0x5a   : > { %576 = vmatpush.bf16.msra.mxu0 %v1591_v2  ;;  %771 = vmatpush.bf16.msra.mxu2 %v1444_v10  ;;  %v1447_v20 = vld [vmem:[#allocation8 + $0xb0] sm:$0xf]  ;;  %v1616_v21 = vld [vmem:[#allocation8 + $0xb8] sm:$0xf0]  ;;  %v1589_v23 = vld [vmem:[#allocation7 + $0x20] sm:$0xff]  ;;  %v1416_v24 = vor.u32 %v1609_v16, %v1415_v15  ;;  %v1420_v27 = vor.u32 %v1608_v18, %v1417_v19  ;;  %p2419_p1 = scmp.eq.s32.totalorder %s2197_s24, 3 }
  0x5b   : > { %v1448_v22 = vor.u32 %v1616_v21, %v1447_v20  ;;  %v1403_v25 = vld [vmem:[#allocation8 + $0x60] sm:$0xf]  ;;  %v1606_v26 = vld [vmem:[#allocation8 + $0x68] sm:$0xf0]  ;;  %v1435_v28 = vld [vmem:[#allocation8 + $0x98] sm:$0xf] }
  0x5c   : > { %v1613_v29 = vld [vmem:[#allocation8 + $0xa0] sm:$0xf0]  ;;  %v1405_v31 = vld [vmem:[#allocation8 + $0x6c] sm:$0xf0]  ;;  %v1423_v33 = vld [vmem:[#allocation8 + $0x80] sm:$0xf]  ;;  %v1404_v35 = vor.u32 %v1606_v26, %v1403_v25 }
  0x5d   : > { %759 = vmatpush.bf16.msra.mxu1 %v1428_v13  ;;  %784 = vmatpush.bf16.msra.mxu3 %v1448_v22  ;;  %v1605_v30 = vld [vmem:[#allocation8 + $0x64] sm:$0xf]  ;;  %v1436_v32 = vor.u32 %v1613_v29, %v1435_v28  ;;  %v1588_v34 = vld [vmem:[#allocation7 + $0x18] sm:$0xff]  ;;  %v1610_v36 = vld [vmem:[#allocation8 + $0x88] sm:$0xf0]  ;;  %s1580_s29 = sshll.u32 %s2197_s24, 3 }
  0x5e   : > { %577 = vmatpush.bf16.msra.mxu0 %v1590_v12  ;;  %772 = vmatpush.bf16.msra.mxu2 %v1432_v17  ;;  %v1391_v37 = vld [vmem:[#allocation8 + $0x48] sm:$0xf]  ;;  %v1603_v38 = vld [vmem:[#allocation8 + $0x50] sm:$0xf0]  ;;  %v1408_v39 = vor.u32 %v1605_v30, %v1405_v31  ;;  %v1602_v40 = vld [vmem:[#allocation8 + $0x4c] sm:$0xf]  ;;  %v1424_v41 = vor.u32 %v1610_v36, %v1423_v33  ;;  %s1144_s9 = scalar_lea.hbm %s2397_s10, %s1580_s29 }
  0x5f   : > { %v1393_v42 = vld [vmem:[#allocation8 + $0x54] sm:$0xf0]  ;;  %v1411_v43 = vld [vmem:[#allocation8 + $0x68] sm:$0xf]  ;;  %v1607_v44 = vld [vmem:[#allocation8 + $0x70] sm:$0xf0]  ;;  %v1392_v46 = vor.u32 %v1603_v38, %v1391_v37 }
  0x60   : > { %v1587_v45 = vld [vmem:[#allocation7 + $0x10] sm:$0xff]  ;;  %v1600_v48 = vld [vmem:[#allocation8 + $0x38] sm:$0xf0]  ;;  %v1396_v49 = vor.u32 %v1602_v40, %v1393_v42  ;;  %v1412_v51 = vor.u32 %v1607_v44, %v1411_v43  ;;  %v1381_v52 = vld [vmem:[#allocation8 + $0x3c] sm:$0xf0]  ;;  %s2420_s5 = sld [smem:[#allocation28_spill]] }
  0x61   : > { %760 = vmatpush.bf16.msra.mxu1 %v1416_v24  ;;  %785 = vmatpush.bf16.msra.mxu3 %v1436_v32  ;;  %v1379_v47 = vld [vmem:[#allocation8 + $0x30] sm:$0xf]  ;;  %v1599_v50 = vld [vmem:[#allocation8 + $0x34] sm:$0xf]  ;;  %v1604_v54 = vld [vmem:[#allocation8 + $0x58] sm:$0xf0] }
  0x62   : > { %578 = vmatpush.bf16.msra.mxu0 %v1589_v23  ;;  %773 = vmatpush.bf16.msra.mxu2 %v1420_v27  ;;  %v1399_v53 = vld [vmem:[#allocation8 + $0x50] sm:$0xf]  ;;  %v1586_v55 = vld [vmem:[#allocation7 + $0x8] sm:$0xff]  ;;  %v1639_v57 = vld [vmem:[#allocation10 + $0xb0] sm:$0xf0]  ;;  %v1380_v58 = vor.u32 %v1600_v48, %v1379_v47  ;;  %v1384_v61 = vor.u32 %v1599_v50, %v1381_v52  ;;  %s1146_s25 = sshll.u32 %s2325_s2, 4  ;;  %s1147_s25 = int_to_ptr.vmem [resolvable:$true] %s1146_s25 }
  0x63   : > { %v1535_v56 = vld [vmem:[#allocation10 + $0xa8] sm:$0xf]  ;;  %v1367_v59 = vld [vmem:[#allocation8 + $0x18] sm:$0xf]  ;;  %v1597_v60 = vld [vmem:[#allocation8 + $0x20] sm:$0xf0]  ;;  %v1400_v63 = vor.u32 %v1604_v54, %v1399_v53 }
  0x64   : > { %v1596_v62 = vld [vmem:[#allocation8 + $0x1c] sm:$0xf]  ;;  %v1369_v0 = vld [vmem:[#allocation8 + $0x24] sm:$0xf0]  ;;  %v1387_v1 = vld [vmem:[#allocation8 + $0x38] sm:$0xf]  ;;  %v1368_v5 = vor.u32 %v1597_v60, %v1367_v59  ;;  %v1536_v6 = vor.u32 %v1639_v57, %v1535_v56 }
  0x65   : > { %761 = vmatpush.bf16.msra.mxu1 %v1404_v35  ;;  %786 = vmatpush.bf16.msra.mxu3 %v1424_v41  ;;  %v1601_v2 = vld [vmem:[#allocation8 + $0x40] sm:$0xf0]  ;;  %v504_v4 = vld [vmem:[%s2307_s3] sm:$0xff]  ;;  %v1355_v8 = vld [vmem:[#allocation8] sm:$0xf]  ;;  %v1372_v10 = vor.u32 %v1596_v62, %v1369_v0  ;;  %s1148_s12 = sshll.u32 %s1144_s9, 4  ;;  %s1149_s12 = int_to_ptr.hbm [resolvable:$true] %s1148_s12 }
  0x66   : > { %579 = vmatpush.bf16.msra.mxu0 %v1588_v34  ;;  %774 = vmatpush.bf16.msra.mxu2 %v1408_v39  ;;  %v1585_v3 = vld [vmem:[#allocation7] sm:$0xff]  ;;  %v1523_v7 = vld [vmem:[#allocation10 + $0x90] sm:$0xf]  ;;  %v1594_v9 = vld [vmem:[#allocation8 + $0x8] sm:$0xf0]  ;;  %v1388_v14 = vor.u32 %v1601_v2, %v1387_v1  ;;  %v506_v15 = vpack.c.bf16 %v504_v4, %v504_v4  ;;  %s1134_s30 = scalar_lea.sflag [#allocation4], %s2303_s21 }
  0x67   : > { %v1636_v11 = vld [vmem:[#allocation10 + $0x98] sm:$0xf0]  ;;  %v1638_v12 = vld [vmem:[#allocation10 + $0xac] sm:$0xf]  ;;  %v1537_v13 = vld [vmem:[#allocation10 + $0xb4] sm:$0xf0]  ;;  %v1356_v18 = vor.u32 %v1594_v9, %v1355_v8 }
  0x68   : > { %v1593_v16 = vld [vmem:[#allocation8 + $0x4] sm:$0xf]  ;;  %v1357_v17 = vld [vmem:[#allocation8 + $0xc] sm:$0xf0]  ;;  %v1640_v20 = vld [vmem:[#allocation10 + $0xb8] sm:$0xf0]  ;;  %v1524_v21 = vor.u32 %v1636_v11, %v1523_v7  ;;  %v1540_v23 = vor.u32 %v1638_v12, %v1537_v13 }
  0x69   : > { %762 = vmatpush.bf16.msra.mxu1 %v1392_v46  ;;  %787 = vmatpush.bf16.msra.mxu3 %v1412_v51  ;;  %v1543_v19 = vld [vmem:[#allocation10 + $0xb0] sm:$0xf]  ;;  %v1511_v22 = vld [vmem:[#allocation10 + $0x78] sm:$0xf]  ;;  %v1633_v24 = vld [vmem:[#allocation10 + $0x80] sm:$0xf0]  ;;  %v1360_v25 = vor.u32 %v1593_v16, %v1357_v17 }
  0x6a   : > { %580 = vmatpush.bf16.msra.mxu0 %v1587_v45  ;;  %775 = vmatpush.bf16.msra.mxu2 %v1396_v49  ;;  %v1635_v26 = vld [vmem:[#allocation10 + $0x94] sm:$0xf]  ;;  %v1525_v27 = vld [vmem:[#allocation10 + $0x9c] sm:$0xf0]  ;;  %v1544_v28 = vor.u32 %v1640_v20, %v1543_v19  ;;  %v1512_v29 = vor.u32 %v1633_v24, %v1511_v22  ;;  %v1630_v32 = vld [vmem:[#allocation10 + $0x68] sm:$0xf0] }
  0x6b   : > { %v1528_v30 = vor.u32 %v1635_v26, %v1525_v27  ;;  %v1499_v31 = vld [vmem:[#allocation10 + $0x60] sm:$0xf]  ;;  %v1487_v34 = vld [vmem:[#allocation10 + $0x48] sm:$0xf]  ;;  %v1627_v35 = vld [vmem:[#allocation10 + $0x50] sm:$0xf0] }
  0x6c   : > { %v1500_v33 = vor.u32 %v1630_v32, %v1499_v31  ;;  %v1488_v36 = vor.u32 %v1627_v35, %v1487_v34  ;;  %v1475_v37 = vld [vmem:[#allocation10 + $0x30] sm:$0xf]  ;;  %v1624_v38 = vld [vmem:[#allocation10 + $0x38] sm:$0xf0]  ;;  %v1463_v40 = vld [vmem:[#allocation10 + $0x18] sm:$0xf] }
  0x6d   : > { %763 = vmatpush.bf16.msra.mxu1 %v1380_v58  ;;  %788 = vmatpush.bf16.msra.mxu3 %v1400_v63  ;;  %v1476_v39 = vor.u32 %v1624_v38, %v1475_v37  ;;  %v1621_v41 = vld [vmem:[#allocation10 + $0x20] sm:$0xf0]  ;;  %v1375_v43 = vld [vmem:[#allocation8 + $0x20] sm:$0xf]  ;;  %v1598_v44 = vld [vmem:[#allocation8 + $0x28] sm:$0xf0] }
  0x6e   : > { %581 = vmatpush.bf16.msra.mxu0 %v1586_v55  ;;  %776 = vmatpush.bf16.msra.mxu2 %v1384_v61  ;;  %v1464_v42 = vor.u32 %v1621_v41, %v1463_v40  ;;  %v1632_v45 = vld [vmem:[#allocation10 + $0x7c] sm:$0xf]  ;;  %v1376_v46 = vor.u32 %v1598_v44, %v1375_v43  ;;  %v1513_v47 = vld [vmem:[#allocation10 + $0x84] sm:$0xf0]  ;;  %v1531_v48 = vld [vmem:[#allocation10 + $0x98] sm:$0xf] }
  0x6f   : > { %v1637_v49 = vld [vmem:[#allocation10 + $0xa0] sm:$0xf0]  ;;  %v1516_v50 = vor.u32 %v1632_v45, %v1513_v47  ;;  %v1451_v52 = vld [vmem:[#allocation10] sm:$0xf]  ;;  %v1618_v53 = vld [vmem:[#allocation10 + $0x8] sm:$0xf0] }
  0x70   : > { %v1532_v51 = vor.u32 %v1637_v49, %v1531_v48  ;;  %v1452_v54 = vor.u32 %v1618_v53, %v1451_v52  ;;  %v1363_v55 = vld [vmem:[#allocation8 + $0x8] sm:$0xf]  ;;  %v1595_v56 = vld [vmem:[#allocation8 + $0x10] sm:$0xf0]  ;;  %v1629_v57 = vld [vmem:[#allocation10 + $0x64] sm:$0xf] }
  0x71   : > { %764 = vmatpush.bf16.msra.mxu1 %v1368_v5  ;;  %789 = vmatpush.bf16.msra.mxu3 %v1388_v14  ;;  %v1364_v58 = vor.u32 %v1595_v56, %v1363_v55  ;;  %v1501_v59 = vld [vmem:[#allocation10 + $0x6c] sm:$0xf0]  ;;  %v1519_v60 = vld [vmem:[#allocation10 + $0x80] sm:$0xf]  ;;  %v1634_v61 = vld [vmem:[#allocation10 + $0x88] sm:$0xf0] }
  0x72   : > { %582 = vmatpush.bf16.msra.mxu0 %v1585_v3  ;;  %777 = vmatpush.bf16.msra.mxu2 %v1372_v10  ;;  %v1504_v62 = vor.u32 %v1629_v57, %v1501_v59  ;;  %v1520_v63 = vor.u32 %v1634_v61, %v1519_v60  ;;  %v2330_v0 = vld [vmem:[#allocation15] sm:$0xff]  ;;  %v1626_v2 = vld [vmem:[#allocation10 + $0x4c] sm:$0xf]  ;;  %v1507_v5 = vld [vmem:[#allocation10 + $0x68] sm:$0xf]  ;;  %s2032_s14 = sshra.s32 %s1149_s12, 4  ;;  %s2033_s14 = int_to_ptr.hbm [resolvable:$true] %s2032_s14 }
  0x73   : > { %v797_v1 = vpack.c.bf16 %v2330_v0, %v2330_v0  ;;  %v1489_v3 = vld [vmem:[#allocation10 + $0x54] sm:$0xf0]  ;;  %v1623_v8 = vld [vmem:[#allocation10 + $0x34] sm:$0xf]  ;;  %v1477_v9 = vld [vmem:[#allocation10 + $0x3c] sm:$0xf0]  ;;  %p2039_p7 = scmp.lt.s32.totalorder %s2033_s14, %s2397_s10 }
  0x74   : > { %v1492_v4 = vor.u32 %v1626_v2, %v1489_v3  ;;  %v1495_v10 = vld [vmem:[#allocation10 + $0x50] sm:$0xf]  ;;  %v1480_v11 = vor.u32 %v1623_v8, %v1477_v9  ;;  %v1628_v12 = vld [vmem:[#allocation10 + $0x58] sm:$0xf0]  ;;  %v1483_v16 = vld [vmem:[#allocation10 + $0x38] sm:$0xf] }
  0x75   : > { %583 = vmatmul.bf16.vlgmr.msra.gmra.mxu0 %v506_v15  ;;  %765 = vmatpush.bf16.msra.mxu1 %v1356_v18  ;;  %v1496_v13 = vor.u32 %v1628_v12, %v1495_v10  ;;  %v1620_v14 = vld [vmem:[#allocation10 + $0x1c] sm:$0xf]  ;;  %v1465_v15 = vld [vmem:[#allocation10 + $0x24] sm:$0xf0]  ;;  %v1625_v17 = vld [vmem:[#allocation10 + $0x40] sm:$0xf0] }
  0x76   : > { %958 = vmatpush.bf16.msrb.mxu0 %v1536_v6  ;;  %778 = vmatpush.bf16.msra.mxu2 %v1360_v25  ;;  %v1631_v6 = vld [vmem:[#allocation10 + $0x70] sm:$0xf0]  ;;  %v1468_v18 = vor.u32 %v1620_v14, %v1465_v15  ;;  %v1484_v19 = vor.u32 %v1625_v17, %v1483_v16  ;;  %v1617_v20 = vld [vmem:[#allocation10 + $0x4] sm:$0xf]  ;;  %v1471_v22 = vld [vmem:[#allocation10 + $0x20] sm:$0xf] }
  0x77   : > { %790 = vmatpush.bf16.msra.mxu3 %v1376_v46  ;;  %v1508_v7 = vor.u32 %v1631_v6, %v1507_v5  ;;  %v1459_v26 = vld [vmem:[#allocation10 + $0x8] sm:$0xf]  ;;  %v1619_v27 = vld [vmem:[#allocation10 + $0x10] sm:$0xf0]  ;;  %v1648_v37 = vld [vmem:[#allocation11 + $0x38] sm:$0xff]  ;;  %s2038_s29 = scalar_lea.hbm %s2397_s10, 32 }
  0x78   : > { %v622_v38 = vld [vmem:[%s2394_s7] sm:$0x7]  ;;  %v1645_v45 = vld [vmem:[#allocation11 + $0x20] sm:$0xff]  ;;  %v1644_v49 = vld [vmem:[#allocation11 + $0x18] sm:$0xff] }
  0x79   : > { %971 = vmatpush.bf16.msrb.mxu1 %v1540_v23  ;;  %v1622_v23 = vld [vmem:[#allocation10 + $0x28] sm:$0xf0]  ;;  %v624_v40 = vperm.slane %v622_v38, 0  ;;  %v625_v52 = vperm.slane %v622_v38, 1  ;;  %v1641_v61 = vld [vmem:[#allocation11] sm:$0xff]  ;;  %v626_v16 = vperm.slane %v622_v38, 2 }
  0x7a   : > { %959 = vmatpush.bf16.msrb.mxu0 %v1524_v21  ;;  %984 = vmatpush.bf16.msrb.mxu2 %v1544_v28  ;;  %v1453_v21 = vld [vmem:[#allocation10 + $0xc] sm:$0xf0]  ;;  %v1472_v25 = vor.u32 %v1622_v23, %v1471_v22  ;;  %v1460_v28 = vor.u32 %v1619_v27, %v1459_v26  ;;  %v1646_v41 = vld [vmem:[#allocation11 + $0x28] sm:$0xff] }
  0x7b   : > { %791 = vmatpush.bf16.msra.mxu3 %v1364_v58  ;;  %v1456_v24 = vor.u32 %v1617_v20, %v1453_v21  ;;  %v1768_v6 = vld [vmem:[%s2395_s8] ss:$0 sm:$0xff] }
  0x7d   : > { %972 = vmatpush.bf16.msrb.mxu1 %v1528_v30 }
  0x7e   : > { %960 = vmatpush.bf16.msrb.mxu0 %v1512_v29  ;;  %985 = vmatpush.bf16.msrb.mxu2 %v1532_v51  ;;  %v1767_v29 = vld [vmem:[#allocation13] ss:$0 sm:$0xff]  ;;  %v1643_v51 = vld [vmem:[#allocation11 + $0x10] sm:$0xff] }
  0x7f   : > { %1118 = vmatpush.bf16.msrb.mxu3 %v1648_v37 }
  0x81   : > { %973 = vmatpush.bf16.msrb.mxu1 %v1516_v50 }
  0x82   : > { %961 = vmatpush.bf16.msrb.mxu0 %v1500_v33  ;;  %986 = vmatpush.bf16.msrb.mxu2 %v1520_v63 }
  0x85   : > { %974 = vmatpush.bf16.msrb.mxu1 %v1504_v62 }
  0x86   : > { %962 = vmatpush.bf16.msrb.mxu0 %v1488_v36  ;;  %987 = vmatpush.bf16.msrb.mxu2 %v1508_v7 }
  0x89   : > { %975 = vmatpush.bf16.msrb.mxu1 %v1492_v4 }
  0x8a   : > { %963 = vmatpush.bf16.msrb.mxu0 %v1476_v39  ;;  %988 = vmatpush.bf16.msrb.mxu2 %v1496_v13  ;;  %v1647_v39 = vld [vmem:[#allocation11 + $0x30] sm:$0xff] }
  0x8b   : > { %1119 = vmatpush.bf16.msrb.mxu3 %v1647_v39 }
  0x8d   : > { %976 = vmatpush.bf16.msrb.mxu1 %v1480_v11 }
  0x8e   : > { %964 = vmatpush.bf16.msrb.mxu0 %v1464_v42  ;;  %989 = vmatpush.bf16.msrb.mxu2 %v1484_v19 }
  0x8f   : > { %1120 = vmatpush.bf16.msrb.mxu3 %v1646_v41 }
  0x91   : > { %977 = vmatpush.bf16.msrb.mxu1 %v1468_v18 }
  0x92   : > { %965 = vmatpush.bf16.msrb.mxu0 %v1452_v54  ;;  %990 = vmatpush.bf16.msrb.mxu2 %v1472_v25  ;;  %v1642_v54 = vld [vmem:[#allocation11 + $0x8] sm:$0xff] }
  0x93   : > { %1121 = vmatpush.bf16.msrb.mxu3 %v1645_v45 }
  0x95   : > { %966 = vmatmul.bf16.vlgmr.msrb.gmra.mxu0 %v797_v1  ;;  %978 = vmatpush.bf16.msrb.mxu1 %v1456_v24 }
  0x96   : > { %991 = vmatpush.bf16.msrb.mxu2 %v1460_v28 }
  0x97   : > { %1122 = vmatpush.bf16.msrb.mxu3 %v1644_v49 }
  0x9b   : > { %1123 = vmatpush.bf16.msrb.mxu3 %v1643_v51 }
  0x9f   : > { %1124 = vmatpush.bf16.msrb.mxu3 %v1642_v54 }
  0xa3   : > { %1125 = vmatpush.bf16.msrb.mxu3 %v1641_v61 }
  0xf2   : > { %v584_v30 = vpop.f32.mrf.mxu0 }
  0xf3   : > { %v585_v31 = vadd.f32 %v1767_v29, %v584_v30 }
  0xf5   : > { %v588_v32 = vmax.f32 %v585_v31, 0.0 }
  0xf7   : > { %v589_v33 = vpack.c.bf16 %v588_v32, %v588_v32 }
  0xf9   : > { %766 = vmatmul.bf16.vlgmr.msra.gmra.mxu1 %v589_v33  ;;  %779 = vmatmul.bf16.vlgmr.msra.gmra.mxu2 %v589_v33 }
  0xfa   : > { %792 = vmatmul.bf16.vlgmr.msra.gmra.mxu3 %v589_v33  ;;  %v586_v34 = vpop.f32.mrf.mxu0 }
 0x109   : > { %979 = vmatmul.bf16.vlgmr.msrb.gmra.mxu1 %v797_v1  ;;  %992 = vmatmul.bf16.vlgmr.msrb.gmra.mxu2 %v797_v1 }
 0x112   : > { %v967_v35 = vpop.f32.mrf.mxu0 }
 0x11a   : > { %v969_v36 = vpop.f32.mrf.mxu0 }
 0x176   : > { %v767_v42 = vpop.f32.mrf.mxu1 }
 0x177   : > { %v768_v43 = vadd.f32 %v767_v42, %v624_v40 }
 0x179   : > { %v997_v44 = vadd.f32 %v967_v35, %v768_v43 }
 0x17b   : > { %v1545_v46 = vmul.f32 -1.442695, %v997_v44 }
 0x17c   : > { %v780_v47 = vpop.f32.mrf.mxu2 }
 0x17d   : > { %1770 = vpow2.f32 %v1545_v46  ;;  %v793_v48 = vpop.f32.mrf.mxu3  ;;  %v781_v57 = vadd.f32 %v780_v47, %v625_v52 }
 0x17e   : > { %v769_v50 = vpop.f32.mrf.mxu1  ;;  %v794_v20 = vadd.f32 %v793_v48, %v626_v16 }
 0x183   : > { %v1771_v53 = vpop.eup %1770 }
 0x184   : > { %v1001_v55 = vadd.f32 1.0, %v1771_v53  ;;  %v782_v56 = vpop.f32.mrf.mxu2 }
 0x185   : > { %v795_v58 = vpop.f32.mrf.mxu3 }
 0x186   : > { %1772 = vrcp.f32 %v1001_v55  ;;  %v980_v59 = vpop.f32.mrf.mxu1  ;;  %v1013_v5 = vand.u32 2147483648, %v1001_v55  ;;  %v1011_v9 = vand.u32 2147483647, %v1001_v55  ;;  %vm1007_vm1 = vweird.f32 %v1001_v55 }
 0x187   : > { %v1017_v60 = vadd.f32 %v980_v59, %v781_v57 }
 0x188   : > { %v1014_v12 = vor.u32 1.1754944e-38, %v1013_v5  ;;  %vm1012_vm3 = vcmp.eq.f32.partialorder %v1011_v9, 8.507059e+37 }
 0x189   : > { %v1546_v62 = vmul.f32 -1.442695, %v1017_v60 }
 0x18b   : > { %1774 = vpow2.f32 %v1546_v62 }
 0x18c   : > { %v1773_v63 = vpop.eup %1772  ;;  %v993_v1 = vpop.f32.mrf.mxu2 }
 0x18d   : > { %v1003_v2 = vmul.f32 %v1773_v63, %v1001_v55  ;;  %vm1008_vm0 = vweird.f32 %v1773_v63  ;;  %v1041_v13 = vadd.f32 %v1768_v6, %v993_v1 }
 0x18e   : > { %v982_v3 = vpop.f32.mrf.mxu1  ;;  %vm1009_vm2 = vmor %vm1007_vm1, %vm1008_vm0 }
 0x18f   : > { %v1004_v4 = vsub.f32 1.0, %v1003_v2 }
 0x191   : > { %v1775_v7 = vpop.eup %1774  ;;  %v1005_v8 = vmul.f32 %v1773_v63, %v1004_v4 }
 0x192   : > { %v1021_v10 = vadd.f32 1.0, %v1775_v7 }
 0x193   : > { %v1006_v11 = vadd.f32 %v1773_v63, %v1005_v8 }
 0x194   : > { %1776 = vrcp.f32 %v1021_v10  ;;  %v995_v14 = vpop.f32.mrf.mxu2  ;;  %v1033_v24 = vand.u32 2147483648, %v1021_v10  ;;  %v1031_v26 = vand.u32 2147483647, %v1021_v10  ;;  %vm1027_vm5 = vweird.f32 %v1021_v10 }
 0x195   : > { %v1010_v15 = vsel %vm1009_vm2, %v1773_v63, %v1006_v11 }
 0x196   : > { %v1015_v17 = vsel %vm1012_vm3, %v1014_v12, %v1010_v15  ;;  %v1034_v28 = vor.u32 1.1754944e-38, %v1033_v24  ;;  %vm1032_vm7 = vcmp.eq.f32.partialorder %v1031_v26, 8.507059e+37 }
 0x197   : > { %v1042_v18 = vmul.f32 %v1041_v13, %v1015_v17 }
 0x199   : > { %v1043_v22 = vadd.f32 %v1042_v18, %v794_v20 }
 0x19a   : > { %v1777_v19 = vpop.eup %1776 }
 0x19b   : > { %v1023_v21 = vmul.f32 %v1777_v19, %v1021_v10  ;;  %vm1028_vm4 = vweird.f32 %v1777_v19  ;;  %1778 = vtanh.f32 %v1043_v22 }
 0x19c   : > { %vm1029_vm6 = vmor %vm1027_vm5, %vm1028_vm4 }
 0x19d   : > { %v1024_v23 = vsub.f32 1.0, %v1023_v21 }
 0x19f   : > { %v1025_v25 = vmul.f32 %v1777_v19, %v1024_v23 }
 0x1a1   : > { %v1026_v27 = vadd.f32 %v1777_v19, %v1025_v25  ;;  %v1779_v32 = vpop.eup %1778 }
 0x1a3   : > { %v1030_v29 = vsel %vm1029_vm6, %v1777_v19, %v1026_v27 }
 0x1a4   : > { %v1035_v30 = vsel %vm1032_vm7, %v1034_v28, %v1030_v29 }
 0x1a5   : > { %v1045_v31 = vsub.f32 1.0, %v1035_v30  ;;  %v1047_v34 = vmul.f32 %v1035_v30, %v2330_v0  ;;  %v1769_v0 = vld [vmem:[%s2420_s5] ss:$0 sm:$0xff] }
 0x1a7   : > { %v1046_v33 = vmul.f32 %v1779_v32, %v1045_v31 }
 0x1a9   : > { %v1048_v35 = vadd.f32 %v1047_v34, %v1046_v33 }
 0x1ab   : > { %v1049_v36 = vpack.c.bf16 %v1048_v35, %v1048_v35  ;;  %1132 = vst [vmem:[#allocation15] sm:$0xff] %v1048_v35 }
 0x1ac   : > { %1677 = dma.vmem_to_hbm [thread:$0]  (%p2419_p1), %s1159_s13, 128, %s1161_s28, [#allocation16]  }
 0x1ad   : > { %1126 = vmatmul.bf16.vlgmr.msrb.gmra.mxu3 %v1049_v36  ;;  %s2034_s13 = scalar_lea.hbm %s2033_s14, 8 }
 0x1ae   : > { %p2035_p4 = scmp.ne.s32.totalorder %s2033_s14, %s2034_s13  ;;  %p2040_p8 = scmp.lt.s32.totalorder %s2038_s29, %s2034_s13 }
 0x1b0   : > { %p2036_p12 = pnand %p2035_p4, %p2272_p5  ;;  %p2041_p9 = por %p2040_p8, %p2039_p7 }
 0x1b2   : > { %p2037_p13 = pneg %p2036_p12 }
 0x1b4   : > { %p2042_p10 = pnand %p2041_p9, %p2037_p13 }
 0x230   : > { %v1127_v37 = vpop.f32.mrf.mxu3 }
 0x231   : > { %v1128_v38 = vadd.f32 %v1769_v0, %v1127_v37 }
 0x233   : > { %1131 = vst [vmem:[%s2325_s2] sm:$0xff] %v1128_v38 }
 0x234   : > { %2045 = shalt.err (!%p2042_p10)
}
 0x235   : > { %1675 = dma.vmem_to_hbm [thread:$0]  (%p2272_p5), %s1147_s25, 128, %s1149_s12, %s1134_s30  }
 0x236   : > { %p2421_p0 = pmov %p2419_p1 }
 0x238   : > { %v1129_v39 = vpop.f32.mrf.mxu3 }
 0x239   : > { %2079 = dma.done.wait (%p2421_p0), [#allocation16], 128   ;;  %p2422_p11 = pmov %p2421_p0 }
 0x23b   : > { %2081 = vsyncadd (%p2422_p11), [#allocation16], 4294967168 }
 0x23c PF: > { %p1723_p2 = scmp.ge.s32.totalorder %s2100_s20, 2  ;;  %s1177_s21 = sand.u32 1, %s2088_s17  }
 0x23d   : > { %s1178_s2 = scalar_lea.sflag [#allocation4], %s1177_s21 }
 0x23e   : > { %p1705_p3 = pnand %p1723_p2, %p2276_p6 }
 0x240   : > { %p1706_p1 = pneg %p1705_p3 }
 0x242   : > { %2083 = dma.done.wait (%p1706_p1), %s1178_s2, 128  }
 0x243   : > { %2085 = vsyncadd (%p1706_p1), %s1178_s2, 4294967168  ;;  %p29_p5 = scmp.ge.s32.totalorder %s2244_s23, 6   ;;  %s2423_s17 = smov %s2092_s18 }
 0x244   : > { %s2424_s18 = smov %s2096_s19  ;;  %s2425_s19 = smov %s2255_s15 }
 0x245   : > { %s2426_s20 = smov %s2244_s23  ;;  %31 = sbr.rel (!%p29_p5) target bundleno = 16 (0x10), region = 141 }
 0x24a   :  { %1184 = vsyncpa [#allocation3], 1 }
 0x24b   :  { %1186 = vsyncpa [#allocation3 + $0x1], 1 }
 0x24c   :  { %1187 = vsyncpa [#allocation6], 1 }
 0x24d   :  { %1188 = vsyncpa [#allocation9], 1 }
 0x24e   :  { %1189 = vsyncpa [#allocation12], 1 }
 0x24f   :  { %1190 = vsyncpa [#allocation4], 1 }
 0x250   :  { %1192 = vsyncpa [#allocation4 + $0x1], 1 }
 0x251   :  { %1193 = vsyncpa [#allocation16], 1 }

</bundles_post_ra>
